<compile_context>
chip_gen: v7x
topology: tpu7x:2x2x1
jax: 0.10.0
libtpu: 0.0.40
codegen_flags: <defaults>
</compile_context>

<pallas_src>
import jax
import jax.numpy as jnp
from jax.experimental import pallas as pl
from jax.experimental.pallas import tpu as pltpu


F_IN, F_HID, F_OUT = 4, 8, 3


def iris_mlp_kernel(w1_ref, b1_ref, w2_ref, b2_ref, x_ref, o_ref):
    """One batch tile of the fused forward pass.

    w1_ref: [4, 8] f32 SMEM     b1_ref: [8] f32 SMEM
    w2_ref: [8, 3] f32 SMEM     b2_ref: [3] f32 SMEM
    x_ref:  [4, TB] f32 VMEM    (features x batch-tile)
    o_ref:  [3, TB] f32 VMEM    (class probabilities x batch-tile)
    """
    x = x_ref[...]                                    # [4, TB]
    xrows = [x[i:i + 1, :] for i in range(F_IN)]      # 4 x [1, TB]

    # fc1 + ReLU: unrolled scalar-broadcast FMAs on the VPU (bias folded into
    # the accumulator start so there is no extra add per hidden unit).
    h = []
    for j in range(F_HID):
        acc = xrows[0] * w1_ref[0, j] + b1_ref[j]
        for i in range(1, F_IN):
            acc = acc + xrows[i] * w1_ref[i, j]
        h.append(jnp.maximum(acc, 0.0))

    # fc2
    logits = []
    for k in range(F_OUT):
        acc = h[0] * w2_ref[0, k] + b2_ref[k]
        for j in range(1, F_HID):
            acc = acc + h[j] * w2_ref[j, k]
        logits.append(acc)

    # Numerically stable softmax over the 3 class rows — elementwise only.
    m = jnp.maximum(jnp.maximum(logits[0], logits[1]), logits[2])
    e = [jnp.exp(l - m) for l in logits]              # 3 x [1, TB]
    denom = e[0] + e[1] + e[2]
    inv = pl.reciprocal(denom, approx=True)           # EUP slot, nearly free
    inv = inv * (2.0 - denom * inv)                   # 1 Newton step -> f32 acc.

    # Lane-dense stores (batch on the 128-lane axis).
    o_ref[0:1, :] = e[0] * inv
    o_ref[1:2, :] = e[1] * inv
    o_ref[2:3, :] = e[2] * inv


def iris_classifier_forward(x, w1, b1, w2, b2, *, tb=1024):
    """x: [B, 4] f32 (PyTorch row layout). Returns [B, 3] softmax probs."""
    B = x.shape[0]
    # Lane tile: multiple of 128; don't over-pad tiny batches.
    tb = max(128, (tb // 128) * 128)
    tb = min(tb, pl.cdiv(B, 128) * 128)
    b_pad = pl.cdiv(B, tb) * tb

    xt = jnp.pad(x.T, ((0, 0), (0, b_pad - B)))       # [4, B_pad], batch on lanes

    out_t = pl.pallas_call(
        iris_mlp_kernel,
        out_shape=jax.ShapeDtypeStruct((F_OUT, b_pad), jnp.float32),
        grid=(b_pad // tb,),
        in_specs=[
            pl.BlockSpec(memory_space=pltpu.MemorySpace.SMEM),  # w1 (resident)
            pl.BlockSpec(memory_space=pltpu.MemorySpace.SMEM),  # b1
            pl.BlockSpec(memory_space=pltpu.MemorySpace.SMEM),  # w2
            pl.BlockSpec(memory_space=pltpu.MemorySpace.SMEM),  # b2
            pl.BlockSpec((F_IN, tb), lambda i: (0, i)),         # x batch tile
        ],
        out_specs=pl.BlockSpec((F_OUT, tb), lambda i: (0, i)),
        compiler_params=pltpu.CompilerParams(
            dimension_semantics=("parallel",)),
    )(w1, b1, w2, b2, xt)

    return out_t[:, :B].T                             # back to [B, 3]


def init_params(key):
    """PyTorch stores Linear weight as [out, in]; we store [in, out] so the
    kernel computes x @ W without a transpose (same math as x @ weight.T)."""
    k1, k2, k3, k4 = jax.random.split(key, 4)
    w1 = jax.random.normal(k1, (F_IN, F_HID), dtype=jnp.float32) * 0.5   # fc1.weight.T
    b1 = jax.random.normal(k2, (F_HID,), dtype=jnp.float32) * 0.1        # fc1.bias
    w2 = jax.random.normal(k3, (F_HID, F_OUT), dtype=jnp.float32) * 0.5  # fc2.weight.T
    b2 = jax.random.normal(k4, (F_OUT,), dtype=jnp.float32) * 0.1        # fc2.bias
    return w1, b1, w2, b2


def reference_forward(x, w1, b1, w2, b2):
    hp = jax.lax.Precision.HIGHEST  # full-f32 reference to compare against VPU FMAs
    h = jnp.maximum(jnp.dot(x, w1, precision=hp) + b1, 0.0)
    logits = jnp.dot(h, w2, precision=hp) + b2
    return jax.nn.softmax(logits, axis=1)


if __name__ == "__main__":
    key = jax.random.PRNGKey(0)
    kx, kp = jax.random.split(key)
    w1, b1, w2, b2 = init_params(kp)

    # Primary check: small iris-style batch (single grid step).
    B = 8
    x = jax.random.normal(kx, (B, F_IN), dtype=jnp.float32)
    out = jax.block_until_ready(iris_classifier_forward(x, w1, b1, w2, b2))
    ref = jax.block_until_ready(reference_forward(x, w1, b1, w2, b2))
    assert out.shape == (B, F_OUT)
    assert jnp.allclose(out, ref, atol=1e-5, rtol=1e-5)
    assert jnp.allclose(jnp.sum(out, axis=1), jnp.ones((B,)), atol=1e-5)

    # Secondary check: exercises the multi-tile grid + lane padding path.
    B2 = 200
    x2 = jax.random.normal(jax.random.PRNGKey(1), (B2, F_IN), dtype=jnp.float32)
    out2 = jax.block_until_ready(
        iris_classifier_forward(x2, w1, b1, w2, b2, tb=128))
    ref2 = jax.block_until_ready(reference_forward(x2, w1, b1, w2, b2))
    assert out2.shape == (B2, F_OUT)
    assert jnp.allclose(out2, ref2, atol=1e-5, rtol=1e-5)
    assert jnp.allclose(jnp.sum(out2, axis=1), jnp.ones((B2,)), atol=1e-5)

    print("KERNEL_OK")
</pallas_src>

<mosaic_0001>
module attributes {stable_mosaic.version = 11 : i64} {
  func.func @iris_mlp_kernel(%arg0: i32, %arg1: memref<4x8xf32, #tpu.memory_space<smem>>, %arg2: memref<8xf32, #tpu.memory_space<smem>>, %arg3: memref<8x3xf32, #tpu.memory_space<smem>>, %arg4: memref<3xf32, #tpu.memory_space<smem>>, %arg5: memref<4x128xf32, #tpu.memory_space<vmem>>, %arg6: memref<3x128xf32, #tpu.memory_space<vmem>>) attributes {dimension_semantics = [#tpu.dimension_semantics<parallel>], iteration_bounds = array<i64: 1>, scalar_prefetch = 0 : i64, scratch_operands = 0 : i64, tpu.core_type = #tpu.core_type<tc>, window_params = [{transform_indices = @transform_0, window_bounds = array<i64: 4, 8>}, {transform_indices = @transform_1, window_bounds = array<i64: 8>}, {transform_indices = @transform_2, window_bounds = array<i64: 8, 3>}, {transform_indices = @transform_3, window_bounds = array<i64: 3>}, {transform_indices = @transform_4, window_bounds = array<i64: 4, 128>}, {transform_indices = @transform_5, window_bounds = array<i64: 3, 128>}]} {
    %c0 = arith.constant 0 : index
    %c0_0 = arith.constant 0 : index
    %0 = vector.load %arg5[%c0, %c0_0] : memref<4x128xf32, #tpu.memory_space<vmem>>, vector<4x128xf32>
    %1 = vector.extract_strided_slice %0 {offsets = [0, 0], sizes = [1, 128], strides = [1, 1]} : vector<4x128xf32> to vector<1x128xf32>
    %2 = vector.extract_strided_slice %0 {offsets = [1, 0], sizes = [1, 128], strides = [1, 1]} : vector<4x128xf32> to vector<1x128xf32>
    %3 = vector.extract_strided_slice %0 {offsets = [2, 0], sizes = [1, 128], strides = [1, 1]} : vector<4x128xf32> to vector<1x128xf32>
    %4 = vector.extract_strided_slice %0 {offsets = [3, 0], sizes = [1, 128], strides = [1, 1]} : vector<4x128xf32> to vector<1x128xf32>
    %c0_1 = arith.constant 0 : index
    %c0_2 = arith.constant 0 : index
    %5 = memref.load %arg1[%c0_1, %c0_2] : memref<4x8xf32, #tpu.memory_space<smem>>
    %6 = vector.broadcast %5 : f32 to vector<1x128xf32>
    %7 = arith.mulf %1, %6 : vector<1x128xf32>
    %c0_3 = arith.constant 0 : index
    %8 = memref.load %arg2[%c0_3] : memref<8xf32, #tpu.memory_space<smem>>
    %9 = vector.broadcast %8 : f32 to vector<1x128xf32>
    %10 = arith.addf %7, %9 : vector<1x128xf32>
    %c1 = arith.constant 1 : index
    %c0_4 = arith.constant 0 : index
    %11 = memref.load %arg1[%c1, %c0_4] : memref<4x8xf32, #tpu.memory_space<smem>>
    %12 = vector.broadcast %11 : f32 to vector<1x128xf32>
    %13 = arith.mulf %2, %12 : vector<1x128xf32>
    %14 = arith.addf %10, %13 : vector<1x128xf32>
    %c2 = arith.constant 2 : index
    %c0_5 = arith.constant 0 : index
    %15 = memref.load %arg1[%c2, %c0_5] : memref<4x8xf32, #tpu.memory_space<smem>>
    %16 = vector.broadcast %15 : f32 to vector<1x128xf32>
    %17 = arith.mulf %3, %16 : vector<1x128xf32>
    %18 = arith.addf %14, %17 : vector<1x128xf32>
    %c3 = arith.constant 3 : index
    %c0_6 = arith.constant 0 : index
    %19 = memref.load %arg1[%c3, %c0_6] : memref<4x8xf32, #tpu.memory_space<smem>>
    %20 = vector.broadcast %19 : f32 to vector<1x128xf32>
    %21 = arith.mulf %4, %20 : vector<1x128xf32>
    %22 = arith.addf %18, %21 : vector<1x128xf32>
    %cst = arith.constant 0.000000e+00 : f32
    %23 = vector.broadcast %cst : f32 to vector<1x128xf32>
    %24 = arith.maximumf %22, %23 : vector<1x128xf32>
    %c0_7 = arith.constant 0 : index
    %c1_8 = arith.constant 1 : index
    %25 = memref.load %arg1[%c0_7, %c1_8] : memref<4x8xf32, #tpu.memory_space<smem>>
    %26 = vector.broadcast %25 : f32 to vector<1x128xf32>
    %27 = arith.mulf %1, %26 : vector<1x128xf32>
    %c1_9 = arith.constant 1 : index
    %28 = memref.load %arg2[%c1_9] : memref<8xf32, #tpu.memory_space<smem>>
    %29 = vector.broadcast %28 : f32 to vector<1x128xf32>
    %30 = arith.addf %27, %29 : vector<1x128xf32>
    %c1_10 = arith.constant 1 : index
    %c1_11 = arith.constant 1 : index
    %31 = memref.load %arg1[%c1_10, %c1_11] : memref<4x8xf32, #tpu.memory_space<smem>>
    %32 = vector.broadcast %31 : f32 to vector<1x128xf32>
    %33 = arith.mulf %2, %32 : vector<1x128xf32>
    %34 = arith.addf %30, %33 : vector<1x128xf32>
    %c2_12 = arith.constant 2 : index
    %c1_13 = arith.constant 1 : index
    %35 = memref.load %arg1[%c2_12, %c1_13] : memref<4x8xf32, #tpu.memory_space<smem>>
    %36 = vector.broadcast %35 : f32 to vector<1x128xf32>
    %37 = arith.mulf %3, %36 : vector<1x128xf32>
    %38 = arith.addf %34, %37 : vector<1x128xf32>
    %c3_14 = arith.constant 3 : index
    %c1_15 = arith.constant 1 : index
    %39 = memref.load %arg1[%c3_14, %c1_15] : memref<4x8xf32, #tpu.memory_space<smem>>
    %40 = vector.broadcast %39 : f32 to vector<1x128xf32>
    %41 = arith.mulf %4, %40 : vector<1x128xf32>
    %42 = arith.addf %38, %41 : vector<1x128xf32>
    %cst_16 = arith.constant 0.000000e+00 : f32
    %43 = vector.broadcast %cst_16 : f32 to vector<1x128xf32>
    %44 = arith.maximumf %42, %43 : vector<1x128xf32>
    %c0_17 = arith.constant 0 : index
    %c2_18 = arith.constant 2 : index
    %45 = memref.load %arg1[%c0_17, %c2_18] : memref<4x8xf32, #tpu.memory_space<smem>>
    %46 = vector.broadcast %45 : f32 to vector<1x128xf32>
    %47 = arith.mulf %1, %46 : vector<1x128xf32>
    %c2_19 = arith.constant 2 : index
    %48 = memref.load %arg2[%c2_19] : memref<8xf32, #tpu.memory_space<smem>>
    %49 = vector.broadcast %48 : f32 to vector<1x128xf32>
    %50 = arith.addf %47, %49 : vector<1x128xf32>
    %c1_20 = arith.constant 1 : index
    %c2_21 = arith.constant 2 : index
    %51 = memref.load %arg1[%c1_20, %c2_21] : memref<4x8xf32, #tpu.memory_space<smem>>
    %52 = vector.broadcast %51 : f32 to vector<1x128xf32>
    %53 = arith.mulf %2, %52 : vector<1x128xf32>
    %54 = arith.addf %50, %53 : vector<1x128xf32>
    %c2_22 = arith.constant 2 : index
    %c2_23 = arith.constant 2 : index
    %55 = memref.load %arg1[%c2_22, %c2_23] : memref<4x8xf32, #tpu.memory_space<smem>>
    %56 = vector.broadcast %55 : f32 to vector<1x128xf32>
    %57 = arith.mulf %3, %56 : vector<1x128xf32>
    %58 = arith.addf %54, %57 : vector<1x128xf32>
    %c3_24 = arith.constant 3 : index
    %c2_25 = arith.constant 2 : index
    %59 = memref.load %arg1[%c3_24, %c2_25] : memref<4x8xf32, #tpu.memory_space<smem>>
    %60 = vector.broadcast %59 : f32 to vector<1x128xf32>
    %61 = arith.mulf %4, %60 : vector<1x128xf32>
    %62 = arith.addf %58, %61 : vector<1x128xf32>
    %cst_26 = arith.constant 0.000000e+00 : f32
    %63 = vector.broadcast %cst_26 : f32 to vector<1x128xf32>
    %64 = arith.maximumf %62, %63 : vector<1x128xf32>
    %c0_27 = arith.constant 0 : index
    %c3_28 = arith.constant 3 : index
    %65 = memref.load %arg1[%c0_27, %c3_28] : memref<4x8xf32, #tpu.memory_space<smem>>
    %66 = vector.broadcast %65 : f32 to vector<1x128xf32>
    %67 = arith.mulf %1, %66 : vector<1x128xf32>
    %c3_29 = arith.constant 3 : index
    %68 = memref.load %arg2[%c3_29] : memref<8xf32, #tpu.memory_space<smem>>
    %69 = vector.broadcast %68 : f32 to vector<1x128xf32>
    %70 = arith.addf %67, %69 : vector<1x128xf32>
    %c1_30 = arith.constant 1 : index
    %c3_31 = arith.constant 3 : index
    %71 = memref.load %arg1[%c1_30, %c3_31] : memref<4x8xf32, #tpu.memory_space<smem>>
    %72 = vector.broadcast %71 : f32 to vector<1x128xf32>
    %73 = arith.mulf %2, %72 : vector<1x128xf32>
    %74 = arith.addf %70, %73 : vector<1x128xf32>
    %c2_32 = arith.constant 2 : index
    %c3_33 = arith.constant 3 : index
    %75 = memref.load %arg1[%c2_32, %c3_33] : memref<4x8xf32, #tpu.memory_space<smem>>
    %76 = vector.broadcast %75 : f32 to vector<1x128xf32>
    %77 = arith.mulf %3, %76 : vector<1x128xf32>
    %78 = arith.addf %74, %77 : vector<1x128xf32>
    %c3_34 = arith.constant 3 : index
    %c3_35 = arith.constant 3 : index
    %79 = memref.load %arg1[%c3_34, %c3_35] : memref<4x8xf32, #tpu.memory_space<smem>>
    %80 = vector.broadcast %79 : f32 to vector<1x128xf32>
    %81 = arith.mulf %4, %80 : vector<1x128xf32>
    %82 = arith.addf %78, %81 : vector<1x128xf32>
    %cst_36 = arith.constant 0.000000e+00 : f32
    %83 = vector.broadcast %cst_36 : f32 to vector<1x128xf32>
    %84 = arith.maximumf %82, %83 : vector<1x128xf32>
    %c0_37 = arith.constant 0 : index
    %c4 = arith.constant 4 : index
    %85 = memref.load %arg1[%c0_37, %c4] : memref<4x8xf32, #tpu.memory_space<smem>>
    %86 = vector.broadcast %85 : f32 to vector<1x128xf32>
    %87 = arith.mulf %1, %86 : vector<1x128xf32>
    %c4_38 = arith.constant 4 : index
    %88 = memref.load %arg2[%c4_38] : memref<8xf32, #tpu.memory_space<smem>>
    %89 = vector.broadcast %88 : f32 to vector<1x128xf32>
    %90 = arith.addf %87, %89 : vector<1x128xf32>
    %c1_39 = arith.constant 1 : index
    %c4_40 = arith.constant 4 : index
    %91 = memref.load %arg1[%c1_39, %c4_40] : memref<4x8xf32, #tpu.memory_space<smem>>
    %92 = vector.broadcast %91 : f32 to vector<1x128xf32>
    %93 = arith.mulf %2, %92 : vector<1x128xf32>
    %94 = arith.addf %90, %93 : vector<1x128xf32>
    %c2_41 = arith.constant 2 : index
    %c4_42 = arith.constant 4 : index
    %95 = memref.load %arg1[%c2_41, %c4_42] : memref<4x8xf32, #tpu.memory_space<smem>>
    %96 = vector.broadcast %95 : f32 to vector<1x128xf32>
    %97 = arith.mulf %3, %96 : vector<1x128xf32>
    %98 = arith.addf %94, %97 : vector<1x128xf32>
    %c3_43 = arith.constant 3 : index
    %c4_44 = arith.constant 4 : index
    %99 = memref.load %arg1[%c3_43, %c4_44] : memref<4x8xf32, #tpu.memory_space<smem>>
    %100 = vector.broadcast %99 : f32 to vector<1x128xf32>
    %101 = arith.mulf %4, %100 : vector<1x128xf32>
    %102 = arith.addf %98, %101 : vector<1x128xf32>
    %cst_45 = arith.constant 0.000000e+00 : f32
    %103 = vector.broadcast %cst_45 : f32 to vector<1x128xf32>
    %104 = arith.maximumf %102, %103 : vector<1x128xf32>
    %c0_46 = arith.constant 0 : index
    %c5 = arith.constant 5 : index
    %105 = memref.load %arg1[%c0_46, %c5] : memref<4x8xf32, #tpu.memory_space<smem>>
    %106 = vector.broadcast %105 : f32 to vector<1x128xf32>
    %107 = arith.mulf %1, %106 : vector<1x128xf32>
    %c5_47 = arith.constant 5 : index
    %108 = memref.load %arg2[%c5_47] : memref<8xf32, #tpu.memory_space<smem>>
    %109 = vector.broadcast %108 : f32 to vector<1x128xf32>
    %110 = arith.addf %107, %109 : vector<1x128xf32>
    %c1_48 = arith.constant 1 : index
    %c5_49 = arith.constant 5 : index
    %111 = memref.load %arg1[%c1_48, %c5_49] : memref<4x8xf32, #tpu.memory_space<smem>>
    %112 = vector.broadcast %111 : f32 to vector<1x128xf32>
    %113 = arith.mulf %2, %112 : vector<1x128xf32>
    %114 = arith.addf %110, %113 : vector<1x128xf32>
    %c2_50 = arith.constant 2 : index
    %c5_51 = arith.constant 5 : index
    %115 = memref.load %arg1[%c2_50, %c5_51] : memref<4x8xf32, #tpu.memory_space<smem>>
    %116 = vector.broadcast %115 : f32 to vector<1x128xf32>
    %117 = arith.mulf %3, %116 : vector<1x128xf32>
    %118 = arith.addf %114, %117 : vector<1x128xf32>
    %c3_52 = arith.constant 3 : index
    %c5_53 = arith.constant 5 : index
    %119 = memref.load %arg1[%c3_52, %c5_53] : memref<4x8xf32, #tpu.memory_space<smem>>
    %120 = vector.broadcast %119 : f32 to vector<1x128xf32>
    %121 = arith.mulf %4, %120 : vector<1x128xf32>
    %122 = arith.addf %118, %121 : vector<1x128xf32>
    %cst_54 = arith.constant 0.000000e+00 : f32
    %123 = vector.broadcast %cst_54 : f32 to vector<1x128xf32>
    %124 = arith.maximumf %122, %123 : vector<1x128xf32>
    %c0_55 = arith.constant 0 : index
    %c6 = arith.constant 6 : index
    %125 = memref.load %arg1[%c0_55, %c6] : memref<4x8xf32, #tpu.memory_space<smem>>
    %126 = vector.broadcast %125 : f32 to vector<1x128xf32>
    %127 = arith.mulf %1, %126 : vector<1x128xf32>
    %c6_56 = arith.constant 6 : index
    %128 = memref.load %arg2[%c6_56] : memref<8xf32, #tpu.memory_space<smem>>
    %129 = vector.broadcast %128 : f32 to vector<1x128xf32>
    %130 = arith.addf %127, %129 : vector<1x128xf32>
    %c1_57 = arith.constant 1 : index
    %c6_58 = arith.constant 6 : index
    %131 = memref.load %arg1[%c1_57, %c6_58] : memref<4x8xf32, #tpu.memory_space<smem>>
    %132 = vector.broadcast %131 : f32 to vector<1x128xf32>
    %133 = arith.mulf %2, %132 : vector<1x128xf32>
    %134 = arith.addf %130, %133 : vector<1x128xf32>
    %c2_59 = arith.constant 2 : index
    %c6_60 = arith.constant 6 : index
    %135 = memref.load %arg1[%c2_59, %c6_60] : memref<4x8xf32, #tpu.memory_space<smem>>
    %136 = vector.broadcast %135 : f32 to vector<1x128xf32>
    %137 = arith.mulf %3, %136 : vector<1x128xf32>
    %138 = arith.addf %134, %137 : vector<1x128xf32>
    %c3_61 = arith.constant 3 : index
    %c6_62 = arith.constant 6 : index
    %139 = memref.load %arg1[%c3_61, %c6_62] : memref<4x8xf32, #tpu.memory_space<smem>>
    %140 = vector.broadcast %139 : f32 to vector<1x128xf32>
    %141 = arith.mulf %4, %140 : vector<1x128xf32>
    %142 = arith.addf %138, %141 : vector<1x128xf32>
    %cst_63 = arith.constant 0.000000e+00 : f32
    %143 = vector.broadcast %cst_63 : f32 to vector<1x128xf32>
    %144 = arith.maximumf %142, %143 : vector<1x128xf32>
    %c0_64 = arith.constant 0 : index
    %c7 = arith.constant 7 : index
    %145 = memref.load %arg1[%c0_64, %c7] : memref<4x8xf32, #tpu.memory_space<smem>>
    %146 = vector.broadcast %145 : f32 to vector<1x128xf32>
    %147 = arith.mulf %1, %146 : vector<1x128xf32>
    %c7_65 = arith.constant 7 : index
    %148 = memref.load %arg2[%c7_65] : memref<8xf32, #tpu.memory_space<smem>>
    %149 = vector.broadcast %148 : f32 to vector<1x128xf32>
    %150 = arith.addf %147, %149 : vector<1x128xf32>
    %c1_66 = arith.constant 1 : index
    %c7_67 = arith.constant 7 : index
    %151 = memref.load %arg1[%c1_66, %c7_67] : memref<4x8xf32, #tpu.memory_space<smem>>
    %152 = vector.broadcast %151 : f32 to vector<1x128xf32>
    %153 = arith.mulf %2, %152 : vector<1x128xf32>
    %154 = arith.addf %150, %153 : vector<1x128xf32>
    %c2_68 = arith.constant 2 : index
    %c7_69 = arith.constant 7 : index
    %155 = memref.load %arg1[%c2_68, %c7_69] : memref<4x8xf32, #tpu.memory_space<smem>>
    %156 = vector.broadcast %155 : f32 to vector<1x128xf32>
    %157 = arith.mulf %3, %156 : vector<1x128xf32>
    %158 = arith.addf %154, %157 : vector<1x128xf32>
    %c3_70 = arith.constant 3 : index
    %c7_71 = arith.constant 7 : index
    %159 = memref.load %arg1[%c3_70, %c7_71] : memref<4x8xf32, #tpu.memory_space<smem>>
    %160 = vector.broadcast %159 : f32 to vector<1x128xf32>
    %161 = arith.mulf %4, %160 : vector<1x128xf32>
    %162 = arith.addf %158, %161 : vector<1x128xf32>
    %cst_72 = arith.constant 0.000000e+00 : f32
    %163 = vector.broadcast %cst_72 : f32 to vector<1x128xf32>
    %164 = arith.maximumf %162, %163 : vector<1x128xf32>
    %c0_73 = arith.constant 0 : index
    %c0_74 = arith.constant 0 : index
    %165 = memref.load %arg3[%c0_73, %c0_74] : memref<8x3xf32, #tpu.memory_space<smem>>
    %166 = vector.broadcast %165 : f32 to vector<1x128xf32>
    %167 = arith.mulf %24, %166 : vector<1x128xf32>
    %c0_75 = arith.constant 0 : index
    %168 = memref.load %arg4[%c0_75] : memref<3xf32, #tpu.memory_space<smem>>
    %169 = vector.broadcast %168 : f32 to vector<1x128xf32>
    %170 = arith.addf %167, %169 : vector<1x128xf32>
    %c1_76 = arith.constant 1 : index
    %c0_77 = arith.constant 0 : index
    %171 = memref.load %arg3[%c1_76, %c0_77] : memref<8x3xf32, #tpu.memory_space<smem>>
    %172 = vector.broadcast %171 : f32 to vector<1x128xf32>
    %173 = arith.mulf %44, %172 : vector<1x128xf32>
    %174 = arith.addf %170, %173 : vector<1x128xf32>
    %c2_78 = arith.constant 2 : index
    %c0_79 = arith.constant 0 : index
    %175 = memref.load %arg3[%c2_78, %c0_79] : memref<8x3xf32, #tpu.memory_space<smem>>
    %176 = vector.broadcast %175 : f32 to vector<1x128xf32>
    %177 = arith.mulf %64, %176 : vector<1x128xf32>
    %178 = arith.addf %174, %177 : vector<1x128xf32>
    %c3_80 = arith.constant 3 : index
    %c0_81 = arith.constant 0 : index
    %179 = memref.load %arg3[%c3_80, %c0_81] : memref<8x3xf32, #tpu.memory_space<smem>>
    %180 = vector.broadcast %179 : f32 to vector<1x128xf32>
    %181 = arith.mulf %84, %180 : vector<1x128xf32>
    %182 = arith.addf %178, %181 : vector<1x128xf32>
    %c4_82 = arith.constant 4 : index
    %c0_83 = arith.constant 0 : index
    %183 = memref.load %arg3[%c4_82, %c0_83] : memref<8x3xf32, #tpu.memory_space<smem>>
    %184 = vector.broadcast %183 : f32 to vector<1x128xf32>
    %185 = arith.mulf %104, %184 : vector<1x128xf32>
    %186 = arith.addf %182, %185 : vector<1x128xf32>
    %c5_84 = arith.constant 5 : index
    %c0_85 = arith.constant 0 : index
    %187 = memref.load %arg3[%c5_84, %c0_85] : memref<8x3xf32, #tpu.memory_space<smem>>
    %188 = vector.broadcast %187 : f32 to vector<1x128xf32>
    %189 = arith.mulf %124, %188 : vector<1x128xf32>
    %190 = arith.addf %186, %189 : vector<1x128xf32>
    %c6_86 = arith.constant 6 : index
    %c0_87 = arith.constant 0 : index
    %191 = memref.load %arg3[%c6_86, %c0_87] : memref<8x3xf32, #tpu.memory_space<smem>>
    %192 = vector.broadcast %191 : f32 to vector<1x128xf32>
    %193 = arith.mulf %144, %192 : vector<1x128xf32>
    %194 = arith.addf %190, %193 : vector<1x128xf32>
    %c7_88 = arith.constant 7 : index
    %c0_89 = arith.constant 0 : index
    %195 = memref.load %arg3[%c7_88, %c0_89] : memref<8x3xf32, #tpu.memory_space<smem>>
    %196 = vector.broadcast %195 : f32 to vector<1x128xf32>
    %197 = arith.mulf %164, %196 : vector<1x128xf32>
    %198 = arith.addf %194, %197 : vector<1x128xf32>
    %c0_90 = arith.constant 0 : index
    %c1_91 = arith.constant 1 : index
    %199 = memref.load %arg3[%c0_90, %c1_91] : memref<8x3xf32, #tpu.memory_space<smem>>
    %200 = vector.broadcast %199 : f32 to vector<1x128xf32>
    %201 = arith.mulf %24, %200 : vector<1x128xf32>
    %c1_92 = arith.constant 1 : index
    %202 = memref.load %arg4[%c1_92] : memref<3xf32, #tpu.memory_space<smem>>
    %203 = vector.broadcast %202 : f32 to vector<1x128xf32>
    %204 = arith.addf %201, %203 : vector<1x128xf32>
    %c1_93 = arith.constant 1 : index
    %c1_94 = arith.constant 1 : index
    %205 = memref.load %arg3[%c1_93, %c1_94] : memref<8x3xf32, #tpu.memory_space<smem>>
    %206 = vector.broadcast %205 : f32 to vector<1x128xf32>
    %207 = arith.mulf %44, %206 : vector<1x128xf32>
    %208 = arith.addf %204, %207 : vector<1x128xf32>
    %c2_95 = arith.constant 2 : index
    %c1_96 = arith.constant 1 : index
    %209 = memref.load %arg3[%c2_95, %c1_96] : memref<8x3xf32, #tpu.memory_space<smem>>
    %210 = vector.broadcast %209 : f32 to vector<1x128xf32>
    %211 = arith.mulf %64, %210 : vector<1x128xf32>
    %212 = arith.addf %208, %211 : vector<1x128xf32>
    %c3_97 = arith.constant 3 : index
    %c1_98 = arith.constant 1 : index
    %213 = memref.load %arg3[%c3_97, %c1_98] : memref<8x3xf32, #tpu.memory_space<smem>>
    %214 = vector.broadcast %213 : f32 to vector<1x128xf32>
    %215 = arith.mulf %84, %214 : vector<1x128xf32>
    %216 = arith.addf %212, %215 : vector<1x128xf32>
    %c4_99 = arith.constant 4 : index
    %c1_100 = arith.constant 1 : index
    %217 = memref.load %arg3[%c4_99, %c1_100] : memref<8x3xf32, #tpu.memory_space<smem>>
    %218 = vector.broadcast %217 : f32 to vector<1x128xf32>
    %219 = arith.mulf %104, %218 : vector<1x128xf32>
    %220 = arith.addf %216, %219 : vector<1x128xf32>
    %c5_101 = arith.constant 5 : index
    %c1_102 = arith.constant 1 : index
    %221 = memref.load %arg3[%c5_101, %c1_102] : memref<8x3xf32, #tpu.memory_space<smem>>
    %222 = vector.broadcast %221 : f32 to vector<1x128xf32>
    %223 = arith.mulf %124, %222 : vector<1x128xf32>
    %224 = arith.addf %220, %223 : vector<1x128xf32>
    %c6_103 = arith.constant 6 : index
    %c1_104 = arith.constant 1 : index
    %225 = memref.load %arg3[%c6_103, %c1_104] : memref<8x3xf32, #tpu.memory_space<smem>>
    %226 = vector.broadcast %225 : f32 to vector<1x128xf32>
    %227 = arith.mulf %144, %226 : vector<1x128xf32>
    %228 = arith.addf %224, %227 : vector<1x128xf32>
    %c7_105 = arith.constant 7 : index
    %c1_106 = arith.constant 1 : index
    %229 = memref.load %arg3[%c7_105, %c1_106] : memref<8x3xf32, #tpu.memory_space<smem>>
    %230 = vector.broadcast %229 : f32 to vector<1x128xf32>
    %231 = arith.mulf %164, %230 : vector<1x128xf32>
    %232 = arith.addf %228, %231 : vector<1x128xf32>
    %c0_107 = arith.constant 0 : index
    %c2_108 = arith.constant 2 : index
    %233 = memref.load %arg3[%c0_107, %c2_108] : memref<8x3xf32, #tpu.memory_space<smem>>
    %234 = vector.broadcast %233 : f32 to vector<1x128xf32>
    %235 = arith.mulf %24, %234 : vector<1x128xf32>
    %c2_109 = arith.constant 2 : index
    %236 = memref.load %arg4[%c2_109] : memref<3xf32, #tpu.memory_space<smem>>
    %237 = vector.broadcast %236 : f32 to vector<1x128xf32>
    %238 = arith.addf %235, %237 : vector<1x128xf32>
    %c1_110 = arith.constant 1 : index
    %c2_111 = arith.constant 2 : index
    %239 = memref.load %arg3[%c1_110, %c2_111] : memref<8x3xf32, #tpu.memory_space<smem>>
    %240 = vector.broadcast %239 : f32 to vector<1x128xf32>
    %241 = arith.mulf %44, %240 : vector<1x128xf32>
    %242 = arith.addf %238, %241 : vector<1x128xf32>
    %c2_112 = arith.constant 2 : index
    %c2_113 = arith.constant 2 : index
    %243 = memref.load %arg3[%c2_112, %c2_113] : memref<8x3xf32, #tpu.memory_space<smem>>
    %244 = vector.broadcast %243 : f32 to vector<1x128xf32>
    %245 = arith.mulf %64, %244 : vector<1x128xf32>
    %246 = arith.addf %242, %245 : vector<1x128xf32>
    %c3_114 = arith.constant 3 : index
    %c2_115 = arith.constant 2 : index
    %247 = memref.load %arg3[%c3_114, %c2_115] : memref<8x3xf32, #tpu.memory_space<smem>>
    %248 = vector.broadcast %247 : f32 to vector<1x128xf32>
    %249 = arith.mulf %84, %248 : vector<1x128xf32>
    %250 = arith.addf %246, %249 : vector<1x128xf32>
    %c4_116 = arith.constant 4 : index
    %c2_117 = arith.constant 2 : index
    %251 = memref.load %arg3[%c4_116, %c2_117] : memref<8x3xf32, #tpu.memory_space<smem>>
    %252 = vector.broadcast %251 : f32 to vector<1x128xf32>
    %253 = arith.mulf %104, %252 : vector<1x128xf32>
    %254 = arith.addf %250, %253 : vector<1x128xf32>
    %c5_118 = arith.constant 5 : index
    %c2_119 = arith.constant 2 : index
    %255 = memref.load %arg3[%c5_118, %c2_119] : memref<8x3xf32, #tpu.memory_space<smem>>
    %256 = vector.broadcast %255 : f32 to vector<1x128xf32>
    %257 = arith.mulf %124, %256 : vector<1x128xf32>
    %258 = arith.addf %254, %257 : vector<1x128xf32>
    %c6_120 = arith.constant 6 : index
    %c2_121 = arith.constant 2 : index
    %259 = memref.load %arg3[%c6_120, %c2_121] : memref<8x3xf32, #tpu.memory_space<smem>>
    %260 = vector.broadcast %259 : f32 to vector<1x128xf32>
    %261 = arith.mulf %144, %260 : vector<1x128xf32>
    %262 = arith.addf %258, %261 : vector<1x128xf32>
    %c7_122 = arith.constant 7 : index
    %c2_123 = arith.constant 2 : index
    %263 = memref.load %arg3[%c7_122, %c2_123] : memref<8x3xf32, #tpu.memory_space<smem>>
    %264 = vector.broadcast %263 : f32 to vector<1x128xf32>
    %265 = arith.mulf %164, %264 : vector<1x128xf32>
    %266 = arith.addf %262, %265 : vector<1x128xf32>
    %267 = arith.maximumf %198, %232 : vector<1x128xf32>
    %268 = arith.maximumf %267, %266 : vector<1x128xf32>
    %269 = arith.subf %198, %268 : vector<1x128xf32>
    %270 = math.exp %269 : vector<1x128xf32>
    %271 = arith.subf %232, %268 : vector<1x128xf32>
    %272 = math.exp %271 : vector<1x128xf32>
    %273 = arith.subf %266, %268 : vector<1x128xf32>
    %274 = math.exp %273 : vector<1x128xf32>
    %275 = arith.addf %270, %272 : vector<1x128xf32>
    %276 = arith.addf %275, %274 : vector<1x128xf32>
    %277 = tpu.reciprocal %276 {approx = true} : vector<1x128xf32> -> vector<1x128xf32>
    %278 = arith.mulf %276, %277 : vector<1x128xf32>
    %cst_124 = arith.constant 2.000000e+00 : f32
    %279 = vector.broadcast %cst_124 : f32 to vector<1x128xf32>
    %280 = arith.subf %279, %278 : vector<1x128xf32>
    %281 = arith.mulf %277, %280 : vector<1x128xf32>
    %282 = arith.mulf %270, %281 : vector<1x128xf32>
    %c0_125 = arith.constant 0 : index
    %c0_126 = arith.constant 0 : index
    %283 = vector.load %arg6[%c0_125, %c0_126] : memref<3x128xf32, #tpu.memory_space<vmem>>, vector<1x128xf32>
    tpu.vector_store %arg6[%c0_125, %c0_126], %282 {strides = array<i32>} : memref<3x128xf32, #tpu.memory_space<vmem>>, vector<1x128xf32>,
    %284 = arith.mulf %272, %281 : vector<1x128xf32>
    %c1_127 = arith.constant 1 : index
    %c0_128 = arith.constant 0 : index
    %285 = vector.load %arg6[%c1_127, %c0_128] : memref<3x128xf32, #tpu.memory_space<vmem>>, vector<1x128xf32>
    tpu.vector_store %arg6[%c1_127, %c0_128], %284 {strides = array<i32>} : memref<3x128xf32, #tpu.memory_space<vmem>>, vector<1x128xf32>,
    %286 = arith.mulf %274, %281 : vector<1x128xf32>
    %c2_129 = arith.constant 2 : index
    %c0_130 = arith.constant 0 : index
    %287 = vector.load %arg6[%c2_129, %c0_130] : memref<3x128xf32, #tpu.memory_space<vmem>>, vector<1x128xf32>
    tpu.vector_store %arg6[%c2_129, %c0_130], %286 {strides = array<i32>} : memref<3x128xf32, #tpu.memory_space<vmem>>, vector<1x128xf32>,
    return
  }
  func.func @transform_0(%arg0: i32) -> (i32, i32) {
    %c0_i32 = arith.constant 0 : i32
    %c0_i32_0 = arith.constant 0 : i32
    %c0_i32_1 = arith.constant 0 : i32
    return %c0_i32, %c0_i32_0 : i32, i32
  }
  func.func @transform_1(%arg0: i32) -> i32 {
    %c0_i32 = arith.constant 0 : i32
    %c0_i32_0 = arith.constant 0 : i32
    return %c0_i32 : i32
  }
  func.func @transform_2(%arg0: i32) -> (i32, i32) {
    %c0_i32 = arith.constant 0 : i32
    %c0_i32_0 = arith.constant 0 : i32
    %c0_i32_1 = arith.constant 0 : i32
    return %c0_i32, %c0_i32_0 : i32, i32
  }
  func.func @transform_3(%arg0: i32) -> i32 {
    %c0_i32 = arith.constant 0 : i32
    %c0_i32_0 = arith.constant 0 : i32
    return %c0_i32 : i32
  }
  func.func @transform_4(%arg0: i32) -> (i32, i32) {
    %c0_i32 = arith.constant 0 : i32
    %c0_i32_0 = arith.constant 0 : i32
    return %c0_i32, %arg0 : i32, i32
  }
  func.func @transform_5(%arg0: i32) -> (i32, i32) {
    %c0_i32 = arith.constant 0 : i32
    %c0_i32_0 = arith.constant 0 : i32
    return %c0_i32, %arg0 : i32, i32
  }
}

</mosaic_0001>

<bundles_post_ra>
// kernel: tpu_custom_call.1
= control target key start
LH: loop header
LB: loop body
LE: loop exit
PB: predicated region body
PF: predicated region fallthrough
CT: control target
= control target key end

     0   :  { %10 = vsyncpa [#allocation4], 0  ;;  %s898_s0 = inlined_call_operand.vmem [shape: f32[4,8], index: 0, kind: input, shape index: {}]   ;;  %s899_s1 = inlined_call_operand.vmem [shape: f32[8], index: 1, kind: input, shape index: {}]   ;;  %s900_s2 = inlined_call_operand.vmem [shape: f32[8,3], index: 2, kind: input, shape index: {}]   ;;  %s901_s3 = inlined_call_operand.vmem [shape: f32[3], index: 3, kind: input, shape index: {}]   ;;  %s902_s4 = inlined_call_operand.vmem [shape: f32[4,128], index: 4, kind: input, shape index: {}]   ;;  %s903_s5 = inlined_call_operand.hbm [shape: f32[3,128], index: 5, kind: output, shape index: {}]  }
   0x1   :  { %11 = vsyncpa [#allocation6], 0 }
   0x2   :  { %12 = vsyncpa [#allocation9], 0  ;;  %s30_s20 = sshll.u32 %s899_s1, 4  ;;  %s31_s20 = int_to_ptr.vmem [resolvable:$true] %s30_s20 }
   0x3   :  { %13 = vsyncpa [#allocation3], 0  ;;  %s20_s23 = sshll.u32 %s898_s0, 4  ;;  %s512_s24 = scalar_lea.vmem %s31_s20, 16  ;;  %s21_s23 = int_to_ptr.vmem [resolvable:$true] %s20_s23 }
   0x4   :  { %p513_p0 = scmp.ne.s32.totalorder %s31_s20, %s512_s24  ;;  %p517_p1 = scmp.lt.s32.totalorder %s31_s20, %s31_s20 }
   0x5   :  { %p518_p2 = scmp.lt.s32.totalorder %s512_s24, %s512_s24 }
   0x7   :  { %p519_p3 = por %p518_p2, %p517_p1 }
   0x9   :  { %p520_p4 = pnand %p519_p3, %p513_p0 }
   0xb   :  { %523 = shalt.err (!%p520_p4)
}
   0xc   :  { %s590_s25 = smov [#allocation5]   ;;  %s524_s26 = scalar_lea.vmem %s21_s23, 64 }
   0xd   :  { %33 = dma.vmem_to_smem %s31_s20, 16, %s590_s25, [#allocation6]  }
   0xe   :  { %p525_p5 = scmp.ne.s32.totalorder %s21_s23, %s524_s26  ;;  %p529_p6 = scmp.lt.s32.totalorder %s21_s23, %s21_s23 }
   0xf   :  { %p530_p7 = scmp.lt.s32.totalorder %s524_s26, %s524_s26 }
  0x11   :  { %p531_p8 = por %p530_p7, %p529_p6 }
  0x13   :  { %p532_p9 = pnand %p531_p8, %p525_p5 }
  0x15   :  { %535 = shalt.err (!%p532_p9)
}
  0x16   :  { %s591_s1 = smov [#allocation2]   ;;  %s40_s28 = sshll.u32 %s900_s2, 4  ;;  %s41_s28 = int_to_ptr.vmem [resolvable:$true] %s40_s28 }
  0x17   :  { %23 = dma.vmem_to_smem %s21_s23, 64, %s591_s1, [#allocation4]  }
  0x18   :  { %s50_s6 = sshll.u32 %s901_s3, 4  ;;  %s536_s7 = scalar_lea.vmem %s41_s28, 128  ;;  %s51_s6 = int_to_ptr.vmem [resolvable:$true] %s50_s6 }
  0x19   :  { %p537_p10 = scmp.ne.s32.totalorder %s41_s28, %s536_s7  ;;  %p541_p11 = scmp.lt.s32.totalorder %s41_s28, %s41_s28 }
  0x1a   :  { %p542_p12 = scmp.lt.s32.totalorder %s536_s7, %s536_s7 }
  0x1c   :  { %p543_p13 = por %p542_p12, %p541_p11 }
  0x1e   :  { %p544_p0 = pnand %p543_p13, %p537_p10 }
  0x20   :  { %547 = shalt.err (!%p544_p0)
}
  0x21   :  { %s592_s8 = smov [#allocation7]   ;;  %s548_s9 = scalar_lea.vmem %s51_s6, 16 }
  0x22   :  { %43 = dma.vmem_to_smem %s41_s28, 128, %s592_s8, [#allocation6]  }
  0x23   :  { %p549_p1 = scmp.ne.s32.totalorder %s51_s6, %s548_s9  ;;  %p553_p2 = scmp.lt.s32.totalorder %s51_s6, %s51_s6 }
  0x24   :  { %p554_p3 = scmp.lt.s32.totalorder %s548_s9, %s548_s9 }
  0x26   :  { %p555_p4 = por %p554_p3, %p553_p2 }
  0x28   :  { %p556_p5 = pnand %p555_p4, %p549_p1 }
  0x2a   :  { %559 = shalt.err (!%p556_p5)
}
  0x2b   :  { %s593_s2 = smov [#allocation8]  }
  0x2c   :  { %53 = dma.vmem_to_smem %s51_s6, 16, %s593_s2, [#allocation9]  }
  0x2d   :  { %582 = dma.done.wait [#allocation4], 64  }
  0x2e   :  { %583 = vsyncadd [#allocation4], 4294967232 }
  0x2f   :  { %584 = dma.done.wait [#allocation6], 144  }
  0x30   :  { %585 = vsyncadd [#allocation6], 4294967152 }
  0x31   :  { %586 = dma.done.wait [#allocation9], 16  }
  0x32   :  { %587 = vsyncadd [#allocation9], 4294967280 }
  0x33   :  { %68 = sfence }
  0x34   :  { %s70_s3 = sld [smem:[#allocation2]]  ;;  %s439_s14 = sld [smem:[#allocation2 + $0x1]]  ;;  %v644_v0 = vld [vmem:[%s902_s4] sm:$0xf] }
  0x35   :  { %s73_s10 = sld [smem:[#allocation5]]  ;;  %s637_s15 = sld [smem:[#allocation5 + $0x1]] }
  0x36   :  { %s436_s11 = sld [smem:[#allocation2 + $0x80]]  ;;  %s639_s16 = sld [smem:[#allocation2 + $0x81]] }
  0x37   :  { %s437_s12 = sld [smem:[#allocation2 + $0x100]]  ;;  %s442_s19 = sld [smem:[#allocation2 + $0x101]] }
  0x38   :  { %s438_s13 = sld [smem:[#allocation2 + $0x180]]  ;;  %s646_s20 = sld [smem:[#allocation2 + $0x181]] }
  0x39   :  { %s648_s21 = sld [smem:[#allocation2 + $0x2]]  ;;  %s661_s25 = sld [smem:[#allocation2 + $0x3]] }
  0x3a   :  { %s650_s22 = sld [smem:[#allocation5 + $0x2]]  ;;  %v71_v1 = vstv %s70_s3  ;;  %v99_v9 = vstv %s439_s14  ;;  %s666_s26 = sld [smem:[#allocation5 + $0x3]] }
  0x3b   :  { %v74_v2 = vstv %s73_s10  ;;  %s652_s23 = sld [smem:[#allocation2 + $0x82]]  ;;  %v72_v3 = vmul.f32 %v71_v1, %v644_v0  ;;  %v100_v12 = vmul.f32 %v99_v9, %v644_v0  ;;  %v102_v13 = vstv %s637_s15  ;;  %s669_s1 = sld [smem:[#allocation2 + $0x83]] }
  0x3c   :  { %s654_s24 = sld [smem:[#allocation2 + $0x102]]  ;;  %v77_v4 = vstv %s436_s11  ;;  %v105_v16 = vstv %s639_s16  ;;  %s673_s0 = sld [smem:[#allocation2 + $0x103]] }
  0x3d   :  { %v84_v5 = vstv %s437_s12  ;;  %s657_s4 = sld [smem:[#allocation2 + $0x182]]  ;;  %v78_v6 = vmul.f32 %v77_v4, %v644_v0  ;;  %v75_v10 = vadd.f32 %v74_v2, %v72_v3  ;;  %v112_v17 = vstv %s442_s19  ;;  %s678_s27 = sld [smem:[#allocation2 + $0x183]] }
  0x3e   :  { %v85_v7 = vmul.f32 %v84_v5, %v644_v0  ;;  %v91_v8 = vstv %s438_s13  ;;  %v103_v19 = vadd.f32 %v102_v13, %v100_v12  ;;  %v106_v20 = vmul.f32 %v105_v16, %v644_v0  ;;  %s680_s28 = sld [smem:[#allocation2 + $0x4]]  ;;  %s701_s8 = sld [smem:[#allocation2 + $0x5]] }
  0x3f   :  { %v92_v11 = vmul.f32 %v91_v8, %v644_v0  ;;  %v80_v14 = vrot.slane %v78_v6, 1  ;;  %v113_v21 = vmul.f32 %v112_v17, %v644_v0  ;;  %v119_v23 = vstv %s646_s20  ;;  %s684_s29 = sld [smem:[#allocation5 + $0x4]]  ;;  %s706_s9 = sld [smem:[#allocation5 + $0x5]] }
  0x40   :  { %v87_v15 = vrot.slane %v85_v7, 2  ;;  %v127_v24 = vstv %s648_s21  ;;  %v130_v25 = vstv %s650_s22  ;;  %v108_v26 = vrot.slane %v106_v20, 1  ;;  %s689_s30 = sld [smem:[#allocation2 + $0x84]]  ;;  %s708_s2 = sld [smem:[#allocation2 + $0x85]] }
  0x41   :  { %v94_v18 = vrot.slane %v92_v11, 3  ;;  %v82_v22 = vadd.f32 %v80_v14, %v75_v10  ;;  %v115_v27 = vrot.slane %v113_v21, 2  ;;  %v120_v28 = vmul.f32 %v119_v23, %v644_v0  ;;  %s691_s6 = sld [smem:[#allocation2 + $0x104]]  ;;  %s711_s3 = sld [smem:[#allocation2 + $0x105]] }
  0x42   :  { %v128_v29 = vmul.f32 %v127_v24, %v644_v0  ;;  %v133_v31 = vstv %s652_s23  ;;  %v140_v32 = vstv %s654_s24  ;;  %v110_v34 = vadd.f32 %v108_v26, %v103_v19  ;;  %s697_s7 = sld [smem:[#allocation2 + $0x184]]  ;;  %s716_s10 = sld [smem:[#allocation2 + $0x185]] }
  0x43   :  { %v89_v30 = vadd.f32 %v87_v15, %v82_v22  ;;  %v147_v33 = vstv %s657_s4  ;;  %v122_v35 = vrot.slane %v120_v28, 3  ;;  %v134_v37 = vmul.f32 %v133_v31, %v644_v0  ;;  %s718_s11 = sld [smem:[#allocation2 + $0x6]]  ;;  %s740_s16 = sld [smem:[#allocation2 + $0x7]] }
  0x44   :  { %v131_v36 = vadd.f32 %v130_v25, %v128_v29  ;;  %v141_v39 = vmul.f32 %v140_v32, %v644_v0  ;;  %v148_v40 = vmul.f32 %v147_v33, %v644_v0  ;;  %v155_v41 = vstv %s661_s25  ;;  %s726_s12 = sld [smem:[#allocation5 + $0x6]]  ;;  %s745_s17 = sld [smem:[#allocation5 + $0x7]] }
  0x45   :  { %v96_v38 = vadd.f32 %v94_v18, %v89_v30  ;;  %v117_v42 = vadd.f32 %v115_v27, %v110_v34  ;;  %v136_v43 = vrot.slane %v134_v37, 1  ;;  %v156_v44 = vmul.f32 %v155_v41, %v644_v0  ;;  %s731_s13 = sld [smem:[#allocation2 + $0x86]]  ;;  %s748_s18 = sld [smem:[#allocation2 + $0x87]] }
  0x46   :  { %v158_v45 = vstv %s666_s26  ;;  %v143_v47 = vrot.slane %v141_v39, 2  ;;  %v161_v48 = vstv %s669_s1  ;;  %v150_v53 = vrot.slane %v148_v40, 3  ;;  %s733_s14 = sld [smem:[#allocation2 + $0x106]]  ;;  %s750_s19 = sld [smem:[#allocation2 + $0x107]] }
  0x47   :  { %v703_v46 = vmax.f32 %v96_v38, 0.0  ;;  %v124_v49 = vadd.f32 %v122_v35, %v117_v42  ;;  %v138_v50 = vadd.f32 %v136_v43, %v131_v36  ;;  %v159_v51 = vadd.f32 %v158_v45, %v156_v44  ;;  %s738_s15 = sld [smem:[#allocation2 + $0x186]]  ;;  %s759_s20 = sld [smem:[#allocation2 + $0x187]] }
  0x48   :  { %v162_v52 = vmul.f32 %v161_v48, %v644_v0  ;;  %v168_v54 = vstv %s673_s0  ;;  %v175_v55 = vstv %s678_s27  ;;  %v183_v56 = vstv %s680_s28  ;;  %s761_s21 = sld [smem:[#allocation7]]  ;;  %s795_s0 = sld [smem:[#allocation7 + $0x1]] }
  0x49   :  { %v145_v57 = vadd.f32 %v143_v47, %v138_v50  ;;  %v169_v59 = vmul.f32 %v168_v54, %v644_v0  ;;  %v186_v60 = vstv %s684_s29  ;;  %v176_v61 = vmul.f32 %v175_v55, %v644_v0  ;;  %s770_s22 = sld [smem:[#allocation8]]  ;;  %s801_s27 = sld [smem:[#allocation8 + $0x1]] }
  0x4a   :  { %v164_v58 = vrot.slane %v162_v52, 1  ;;  %v184_v62 = vmul.f32 %v183_v56, %v644_v0  ;;  %v189_v63 = vstv %s689_s30  ;;  %v196_v1 = vstv %s691_s6  ;;  %s772_s23 = sld [smem:[#allocation7 + $0x80]]  ;;  %s803_s28 = sld [smem:[#allocation7 + $0x81]] }
  0x4b   :  { %v728_v2 = vmax.f32 %v124_v49, 0.0  ;;  %v171_v4 = vrot.slane %v169_v59, 2  ;;  %v190_v5 = vmul.f32 %v189_v63, %v644_v0  ;;  %v178_v6 = vrot.slane %v176_v61, 3  ;;  %s775_s24 = sld [smem:[#allocation7 + $0x100]]  ;;  %s807_s29 = sld [smem:[#allocation7 + $0x101]] }
  0x4c   :  { %v166_v3 = vadd.f32 %v164_v58, %v159_v51  ;;  %v187_v7 = vadd.f32 %v186_v60, %v184_v62  ;;  %v197_v8 = vmul.f32 %v196_v1, %v644_v0  ;;  %v203_v9 = vstv %s697_s7  ;;  %s780_s4 = sld [smem:[#allocation7 + $0x180]]  ;;  %s811_s30 = sld [smem:[#allocation7 + $0x181]] }
  0x4d   :  { %v152_v10 = vadd.f32 %v150_v53, %v145_v57  ;;  %v192_v12 = vrot.slane %v190_v5, 1  ;;  %v204_v13 = vmul.f32 %v203_v9, %v644_v0  ;;  %v211_v15 = vstv %s701_s8  ;;  %s782_s25 = sld [smem:[#allocation7 + $0x200]]  ;;  %s813_s6 = sld [smem:[#allocation7 + $0x201]] }
  0x4e   :  { %v173_v11 = vadd.f32 %v171_v4, %v166_v3  ;;  %v199_v14 = vrot.slane %v197_v8, 2  ;;  %v214_v16 = vstv %s706_s9  ;;  %v217_v17 = vstv %s708_s2  ;;  %s789_s26 = sld [smem:[#allocation7 + $0x280]]  ;;  %s823_s8 = sld [smem:[#allocation7 + $0x281]] }
  0x4f   :  { %v194_v19 = vadd.f32 %v192_v12, %v187_v7  ;;  %v206_v20 = vrot.slane %v204_v13, 3  ;;  %v212_v21 = vmul.f32 %v211_v15, %v644_v0  ;;  %v218_v22 = vmul.f32 %v217_v17, %v644_v0  ;;  %s793_s1 = sld [smem:[#allocation7 + $0x300]]  ;;  %s825_s9 = sld [smem:[#allocation7 + $0x2]] }
  0x50   :  { %v180_v18 = vadd.f32 %v178_v6, %v173_v11  ;;  %v224_v23 = vstv %s711_s3  ;;  %v231_v24 = vstv %s716_s10  ;;  %v239_v25 = vstv %s718_s11  ;;  %s819_s7 = sld [smem:[#allocation7 + $0x380]]  ;;  %s831_s2 = sld [smem:[#allocation8 + $0x2]] }
  0x51   :  { %v756_v26 = vmax.f32 %v152_v10, 0.0  ;;  %v201_v27 = vadd.f32 %v199_v14, %v194_v19  ;;  %v215_v28 = vadd.f32 %v214_v16, %v212_v21  ;;  %v225_v29 = vmul.f32 %v224_v23, %v644_v0  ;;  %s833_s3 = sld [smem:[#allocation7 + $0x82]]  ;;  %s838_s10 = sld [smem:[#allocation7 + $0x301]] }
  0x52   :  { %v220_v30 = vrot.slane %v218_v22, 1  ;;  %v232_v31 = vmul.f32 %v231_v24, %v644_v0  ;;  %v240_v32 = vmul.f32 %v239_v25, %v644_v0  ;;  %v242_v33 = vstv %s726_s12  ;;  %s840_s11 = sld [smem:[#allocation7 + $0x381]]  ;;  %s845_s12 = sld [smem:[#allocation7 + $0x102]] }
  0x53   :  { %v766_v34 = vmax.f32 %v180_v18, 0.0  ;;  %v227_v35 = vrot.slane %v225_v29, 2  ;;  %v245_v36 = vstv %s731_s13  ;;  %v252_v37 = vstv %s733_s14  ;;  %s847_s13 = sld [smem:[#allocation7 + $0x182]] }
  0x54   :  { %v208_v38 = vadd.f32 %v206_v20, %v201_v27  ;;  %v222_v39 = vadd.f32 %v220_v30, %v215_v28  ;;  %v243_v40 = vadd.f32 %v242_v33, %v240_v32  ;;  %v246_v41 = vmul.f32 %v245_v36, %v644_v0  ;;  %s854_s14 = sld [smem:[#allocation7 + $0x202]] }
  0x55   :  { %v234_v42 = vrot.slane %v232_v31, 3  ;;  %v253_v43 = vmul.f32 %v252_v37, %v644_v0  ;;  %v259_v44 = vstv %s738_s15  ;;  %v267_v45 = vstv %s740_s16  ;;  %s860_s15 = sld [smem:[#allocation7 + $0x282]] }
  0x56   :  { %v229_v47 = vadd.f32 %v227_v35, %v222_v39  ;;  %v248_v48 = vrot.slane %v246_v41, 1  ;;  %v260_v49 = vmul.f32 %v259_v44, %v644_v0  ;;  %v268_v50 = vmul.f32 %v267_v45, %v644_v0  ;;  %s868_s16 = sld [smem:[#allocation7 + $0x302]] }
  0x57   :  { %v255_v51 = vrot.slane %v253_v43, 2  ;;  %v270_v52 = vstv %s745_s17  ;;  %v273_v53 = vstv %s748_s18  ;;  %v280_v54 = vstv %s750_s19  ;;  %s498_s17 = sld [smem:[#allocation7 + $0x382]]  ;;  %s594_s18 = smov [#allocation10]  }
  0x58   :  { %v791_v55 = vmax.f32 %v208_v38, 0.0  ;;  %v250_v56 = vadd.f32 %v248_v48, %v243_v40  ;;  %v262_v57 = vrot.slane %v260_v49, 3  ;;  %v271_v58 = vadd.f32 %v270_v52, %v268_v50  ;;  %s425_s19 = sshll.u32 %s594_s18, 4  ;;  %s426_s19 = int_to_ptr.vmem [resolvable:$true] %s425_s19 }
  0x59   :  { %v274_v59 = vmul.f32 %v273_v53, %v644_v0  ;;  %v281_v60 = vmul.f32 %v280_v54, %v644_v0  ;;  %v287_v61 = vstv %s759_s20  ;;  %v295_v62 = vstv %s761_s21  ;;  %s560_s20 = scalar_lea.vmem %s426_s19, 64  ;;  %p565_p7 = scmp.lt.s32.totalorder %s426_s19, %s426_s19 }
  0x5a   :  { %v236_v63 = vadd.f32 %v234_v42, %v229_v47  ;;  %v257_v1 = vadd.f32 %v255_v51, %v250_v56  ;;  %v288_v3 = vmul.f32 %v287_v61, %v644_v0  ;;  %v296_v4 = vmul.f32 %v295_v62, %v703_v46  ;;  %p561_p6 = scmp.ne.s32.totalorder %s426_s19, %s560_s20  ;;  %p566_p8 = scmp.lt.s32.totalorder %s560_s20, %s560_s20 }
  0x5b   :  { %v276_v5 = vrot.slane %v274_v59, 1  ;;  %v283_v6 = vrot.slane %v281_v60, 2  ;;  %v298_v7 = vstv %s770_s22  ;;  %v301_v8 = vstv %s772_s23 }
  0x5c   :  { %v264_v9 = vadd.f32 %v262_v57, %v257_v1  ;;  %v290_v10 = vrot.slane %v288_v3, 3  ;;  %v299_v11 = vadd.f32 %v298_v7, %v296_v4  ;;  %v302_v12 = vmul.f32 %v301_v8, %v728_v2  ;;  %p567_p9 = por %p566_p8, %p565_p7 }
  0x5d   :  { %v278_v13 = vadd.f32 %v276_v5, %v271_v58  ;;  %v305_v0 = vstv %s775_s24  ;;  %v309_v14 = vstv %s780_s4  ;;  %v313_v15 = vstv %s782_s25 }
  0x5e   :  { %v303_v16 = vadd.f32 %v302_v12, %v299_v11  ;;  %v306_v17 = vmul.f32 %v305_v0, %v756_v26  ;;  %v310_v18 = vmul.f32 %v309_v14, %v766_v34  ;;  %v827_v19 = vmax.f32 %v236_v63, 0.0  ;;  %p568_p10 = pnand %p567_p9, %p561_p6 }
  0x5f   :  { %v829_v20 = vmax.f32 %v264_v9, 0.0  ;;  %v285_v21 = vadd.f32 %v283_v6, %v278_v13  ;;  %v314_v23 = vmul.f32 %v313_v15, %v791_v55  ;;  %v317_v24 = vstv %s789_s26 }
  0x60   :  { %v307_v22 = vadd.f32 %v306_v17, %v303_v16  ;;  %v321_v25 = vstv %s793_s1  ;;  %v329_v28 = vstv %s795_s0  ;;  %v332_v29 = vstv %s801_s27 }
  0x61   :  { %v292_v27 = vadd.f32 %v290_v10, %v285_v21  ;;  %v335_v30 = vstv %s803_s28  ;;  %v330_v32 = vmul.f32 %v329_v28, %v703_v46  ;;  %v339_v35 = vstv %s807_s29 }
  0x62   :  { %v311_v31 = vadd.f32 %v310_v18, %v307_v22  ;;  %v336_v33 = vmul.f32 %v335_v30, %v728_v2  ;;  %v343_v36 = vstv %s811_s30  ;;  %v347_v37 = vstv %s813_s6 }
  0x63   :  { %v333_v38 = vadd.f32 %v332_v29, %v330_v32  ;;  %v340_v39 = vmul.f32 %v339_v35, %v756_v26  ;;  %v318_v41 = vmul.f32 %v317_v24, %v827_v19  ;;  %v322_v42 = vmul.f32 %v321_v25, %v829_v20 }
  0x64   :  { %v315_v40 = vadd.f32 %v314_v23, %v311_v31  ;;  %v325_v43 = vstv %s819_s7  ;;  %v293_v44 = vmax.f32 %v292_v27, 0.0  ;;  %v344_v47 = vmul.f32 %v343_v36, %v766_v34 }
  0x65   :  { %v337_v45 = vadd.f32 %v336_v33, %v333_v38  ;;  %v348_v48 = vmul.f32 %v347_v37, %v791_v55  ;;  %v351_v49 = vstv %s823_s8  ;;  %v363_v50 = vstv %s825_s9 }
  0x66   :  { %v366_v51 = vstv %s831_s2  ;;  %v369_v52 = vstv %s833_s3  ;;  %v355_v54 = vstv %s838_s10  ;;  %v364_v56 = vmul.f32 %v363_v50, %v703_v46 }
  0x67   :  { %v341_v53 = vadd.f32 %v340_v39, %v337_v45  ;;  %v370_v57 = vmul.f32 %v369_v52, %v728_v2  ;;  %v319_v58 = vadd.f32 %v318_v41, %v315_v40  ;;  %v359_v59 = vstv %s840_s11 }
  0x68   :  { %v373_v60 = vstv %s845_s12  ;;  %v377_v61 = vstv %s847_s13  ;;  %v352_v63 = vmul.f32 %v351_v49, %v827_v19  ;;  %v367_v1 = vadd.f32 %v366_v51, %v364_v56 }
  0x69   :  { %v345_v62 = vadd.f32 %v344_v47, %v341_v53  ;;  %v374_v3 = vmul.f32 %v373_v60, %v756_v26  ;;  %v381_v4 = vstv %s854_s14  ;;  %v356_v6 = vmul.f32 %v355_v54, %v829_v20 }
  0x6a   :  { %v371_v46 = vadd.f32 %v370_v57, %v367_v1  ;;  %v378_v2 = vmul.f32 %v377_v61, %v766_v34  ;;  %v326_v7 = vmul.f32 %v325_v43, %v293_v44  ;;  %v360_v8 = vmul.f32 %v359_v59, %v293_v44 }
  0x6b   :  { %v349_v5 = vadd.f32 %v348_v48, %v345_v62  ;;  %v385_v9 = vstv %s860_s15  ;;  %v323_v10 = vadd.f32 %v322_v42, %v319_v58  ;;  %v382_v13 = vmul.f32 %v381_v4, %v791_v55 }
  0x6c   :  { %v375_v12 = vadd.f32 %v374_v3, %v371_v46  ;;  %v389_v0 = vstv %s868_s16  ;;  %v386_v26 = vmul.f32 %v385_v9, %v827_v19  ;;  %v393_v16 = vstv %s498_s17 }
  0x6d   :  { %v353_v11 = vadd.f32 %v352_v63, %v349_v5  ;;  %v327_v17 = vadd.f32 %v326_v7, %v323_v10  ;;  %v390_v22 = vmul.f32 %v389_v0, %v829_v20  ;;  %v394_v23 = vmul.f32 %v393_v16, %v293_v44 }
  0x6e   :  { %v379_v15 = vadd.f32 %v378_v2, %v375_v12 }
  0x6f   :  { %v357_v14 = vadd.f32 %v356_v6, %v353_v11 }
  0x70   :  { %v383_v21 = vadd.f32 %v382_v13, %v379_v15 }
  0x71   :  { %v361_v18 = vadd.f32 %v360_v8, %v357_v14 }
  0x72   :  { %v387_v34 = vadd.f32 %v386_v26, %v383_v21 }
  0x73   :  { %v396_v25 = vmax.f32 %v327_v17, %v361_v18 }
  0x74   :  { %v391_v24 = vadd.f32 %v390_v22, %v387_v34 }
  0x76   :  { %v395_v27 = vadd.f32 %v394_v23, %v391_v24 }
  0x78   :  { %v397_v28 = vmax.f32 %v396_v25, %v395_v27 }
  0x7a   :  { %v398_v29 = vsub.f32 %v327_v17, %v397_v28  ;;  %v401_v30 = vsub.f32 %v361_v18, %v397_v28  ;;  %v404_v55 = vsub.f32 %v395_v27, %v397_v28 }
  0x7c   :  { %v399_v31 = vmul.f32 1.442695, %v398_v29  ;;  %v402_v32 = vmul.f32 1.442695, %v401_v30  ;;  %v405_v33 = vmul.f32 1.442695, %v404_v55 }
  0x7e   :  { %504 = vpow2.f32 %v399_v31 }
  0x7f   :  { %506 = vpow2.f32 %v402_v32 }
  0x80   :  { %508 = vpow2.f32 %v405_v33 }
  0x88   :  { %v505_v19 = vpop.eup %504 }
  0x89   :  { %v507_v35 = vpop.eup %506 }
  0x8a   :  { %v509_v36 = vpop.eup %508  ;;  %v407_v37 = vadd.f32 %v507_v35, %v505_v19 }
  0x8c   :  { %v408_v20 = vadd.f32 %v509_v36, %v407_v37 }
  0x8e   :  { %510 = vrcp.f32 %v408_v20 }
  0x98   :  { %v511_v38 = vpop.eup %510 }
  0x99   :  { %v410_v39 = vmul.f32 %v511_v38, %v408_v20 }
  0x9b   :  { %v411_v40 = vsub.f32 2.0, %v410_v39 }
  0x9d   :  { %v412_v41 = vmul.f32 %v511_v38, %v411_v40 }
  0x9f   :  { %v413_v42 = vmul.f32 %v505_v19, %v412_v41  ;;  %v415_v43 = vmul.f32 %v507_v35, %v412_v41  ;;  %v417_v44 = vmul.f32 %v509_v36, %v412_v41 }
  0xa1   :  { %414 = vst [vmem:[#allocation10] sm:$0x1] %v413_v42  ;;  %416 = vst [vmem:[#allocation10 + $0x1] sm:$0x1] %v415_v43 }
  0xa2   :  { %418 = vst [vmem:[#allocation10 + $0x2] sm:$0x1] %v417_v44 }
  0xa3   :  { %571 = shalt.err (!%p568_p10)
}
  0xa4   :  { %s572_s23 = scalar_lea.hbm %s903_s5, 64 }
  0xa5   :  { %p573_p11 = scmp.ne.s32.totalorder %s903_s5, %s572_s23  ;;  %p576_p12 = scmp.lt.u32.totalorder %s572_s23, %s903_s5 }
  0xa7   :  { %p578_p13 = pnand %p576_p12, %p573_p11 }
  0xa9   :  { %581 = shalt.err (!%p578_p13)
}
  0xaa   :  { %428 = dma.vmem_to_hbm [thread:$0]  %s426_s19, 64, %s903_s5, [#allocation3]  }
  0xab   :  { %588 = dma.done.wait [#allocation3], 64  }
  0xac   :  { %589 = vsyncadd [#allocation3], 4294967232 }
  0xad   :  { %432 = vsyncpa [#allocation3], 1 }
  0xae   :  { %433 = vsyncpa [#allocation4], 1 }
  0xaf   :  { %434 = vsyncpa [#allocation6], 1 }
  0xb0   :  { %435 = vsyncpa [#allocation9], 1 }

</bundles_post_ra>
